<compile_context>
chip_gen: v5e
topology: v5e:2x2
jax: 0.10.0
libtpu: 0.0.40
codegen_flags: <defaults>
</compile_context>

<pallas_src>
import functools

import jax
import jax.numpy as jnp
from jax.experimental import pallas as pl
from jax.experimental.pallas import tpu as pltpu


def _round_up(x, m):
    return ((x + m - 1) // m) * m


def _choose_block_rows(B, C, itemsize):
    """Pick a batch-tile size: big enough to amortize per-step overhead,
    small enough that 2 inputs x 2 pipeline buffers fit v7x's 64 MiB VMEM."""
    mult = 8 if itemsize >= 4 else 16          # (8,128) f32 / (16,128) bf16 tiling
    row_bytes = C * itemsize
    target_bytes = 4 * 1024 * 1024             # ~4 MiB per input block
    input_budget = 24 * 1024 * 1024            # 2 inputs x 2 buffers x block
    tb = max(1, min(target_bytes // row_bytes, input_budget // (4 * row_bytes)))
    tb = max(mult, (tb // mult) * mult)
    tb = min(tb, _round_up(B, mult))
    return int(tb)


def _kd_kl_kernel(ys_ref, yt_ref, out_ref, *, temperature, batch, block_rows):
    inv_t = 1.0 / temperature
    # Upcast to f32 for stable softmax / log math on the VPU/EUP.
    ys = ys_ref[...].astype(jnp.float32) * inv_t
    yt = yt_ref[...].astype(jnp.float32) * inv_t

    # log_softmax(y_s / T) along the class axis (axis=1).
    s_max = jnp.max(ys, axis=1, keepdims=True)
    s_shift = ys - s_max
    s_lse = jnp.log(jnp.sum(jnp.exp(s_shift), axis=1, keepdims=True))
    log_p_s = s_shift - s_lse

    # softmax(y_t / T) pieces along the class axis.
    t_max = jnp.max(yt, axis=1, keepdims=True)
    t_shift = yt - t_max
    t_exp = jnp.exp(t_shift)
    t_sum = jnp.sum(t_exp, axis=1, keepdims=True)
    log_t_sum = jnp.log(t_sum)

    # row_kl = sum_j p_t * (log_p_t - log_p_s)
    #        = (1 / t_sum) * sum_j t_exp * (t_shift - log(t_sum) - log_p_s)
    # (factor 1/t_sum out of the row sum: no full-size p_t temporary).
    inner = jnp.sum(t_exp * (t_shift - log_t_sum - log_p_s),
                    axis=1, keepdims=True)
    row_kl = inner * pl.reciprocal(t_sum, approx=False)

    # Mask padded rows of the last batch block (B % TB != 0).
    blk = pl.program_id(0)
    row_ids = blk * block_rows + jax.lax.broadcasted_iota(
        jnp.int32, (block_rows, 1), 0)
    row_kl = jnp.where(row_ids < batch, row_kl, 0.0)

    out_ref[...] = row_kl


def decouple_kldiv(y_s, y_t, T, *, block_rows=None):
    """Pallas forward of decople_KLDiv. y_s, y_t: [B, C] logits (f32 or bf16).
    Returns a scalar f32 loss."""
    assert y_s.shape == y_t.shape and y_s.ndim == 2
    B, C = y_s.shape
    itemsize = jnp.dtype(y_s.dtype).itemsize
    tb = block_rows if block_rows is not None else _choose_block_rows(B, C, itemsize)

    num_blocks = pl.cdiv(B, tb)
    b_pad = num_blocks * tb

    kernel = functools.partial(
        _kd_kl_kernel, temperature=float(T), batch=B, block_rows=tb)

    block_bytes = tb * C * itemsize
    vmem_limit = max(32 * 1024 * 1024, int(4 * block_bytes * 3 // 2))

    row_sums = pl.pallas_call(
        kernel,
        out_shape=jax.ShapeDtypeStruct((b_pad, 1), jnp.float32),
        grid=(num_blocks,),
        in_specs=[
            pl.BlockSpec((tb, C), lambda i: (i, 0)),
            pl.BlockSpec((tb, C), lambda i: (i, 0)),
        ],
        out_specs=pl.BlockSpec((tb, 1), lambda i: (i, 0)),
        compiler_params=pltpu.CompilerParams(
            dimension_semantics=("parallel",),
            vmem_limit_bytes=vmem_limit,
        ),
    )(y_s, y_t)

    # Final tiny reduction + batchmean * T^2 scaling outside the kernel.
    return jnp.sum(row_sums) * (float(T) * float(T) / float(B))


def _reference(y_s, y_t, T):
    # Pure-JAX reference of the PyTorch forward, for a sanity check.
    ys = y_s.astype(jnp.float32) / T
    yt = y_t.astype(jnp.float32) / T
    log_p_s = jax.nn.log_softmax(ys, axis=1)
    p_t = jax.nn.softmax(yt, axis=1)
    log_p_t = jax.nn.log_softmax(yt, axis=1)
    kl = p_t * (log_p_t - log_p_s)
    return jnp.sum(kl) / y_s.shape[0] * (T ** 2)


if __name__ == "__main__":
    # decople_KLDiv(T) has no learnable parameters; only the temperature T.
    T = 4.0
    key = jax.random.PRNGKey(0)

    # Case 1: small lane-friendly shape, single block (heuristic TB).
    B1, C1 = 8, 128
    k1, k2, k3, k4 = jax.random.split(key, 4)
    y_s1 = jax.random.normal(k1, (B1, C1), dtype=jnp.float32)
    y_t1 = jax.random.normal(k2, (B1, C1), dtype=jnp.float32)
    loss1 = jax.block_until_ready(decouple_kldiv(y_s1, y_t1, T))
    ref1 = jax.block_until_ready(_reference(y_s1, y_t1, T))
    assert jnp.allclose(loss1, ref1, rtol=1e-5, atol=1e-5), (loss1, ref1)

    # Case 2: multi-block grid with a padded last block (B % TB != 0),
    # exercising the batch tiling + in-kernel row masking.
    B2, C2 = 40, 256
    y_s2 = jax.random.normal(k3, (B2, C2), dtype=jnp.float32)
    y_t2 = jax.random.normal(k4, (B2, C2), dtype=jnp.float32)
    loss2 = jax.block_until_ready(decouple_kldiv(y_s2, y_t2, T, block_rows=16))
    ref2 = jax.block_until_ready(_reference(y_s2, y_t2, T))
    assert jnp.allclose(loss2, ref2, rtol=1e-5, atol=1e-5), (loss2, ref2)

    print("KERNEL_OK")
</pallas_src>

<mosaic_0001>
module attributes {stable_mosaic.version = 11 : i64} {
  func.func @_kd_kl_kernel(%arg0: i32, %arg1: memref<8x128xf32, #tpu.memory_space<vmem>>, %arg2: memref<8x128xf32, #tpu.memory_space<vmem>>, %arg3: memref<8x1xf32, #tpu.memory_space<vmem>>) attributes {dimension_semantics = [#tpu.dimension_semantics<parallel>], iteration_bounds = array<i64: 1>, scalar_prefetch = 0 : i64, scratch_operands = 0 : i64, tpu.core_type = #tpu.core_type<tc>, window_params = [{transform_indices = @transform_0, window_bounds = array<i64: 8, 128>}, {transform_indices = @transform_1, window_bounds = array<i64: 8, 128>}, {transform_indices = @transform_2, window_bounds = array<i64: 8, 1>}]} {
    %c0 = arith.constant 0 : index
    %c0_0 = arith.constant 0 : index
    %0 = vector.load %arg1[%c0, %c0_0] : memref<8x128xf32, #tpu.memory_space<vmem>>, vector<8x128xf32>
    %cst = arith.constant 2.500000e-01 : f32
    %1 = vector.broadcast %cst : f32 to vector<8x128xf32>
    %2 = arith.mulf %0, %1 : vector<8x128xf32>
    %c0_1 = arith.constant 0 : index
    %c0_2 = arith.constant 0 : index
    %3 = vector.load %arg2[%c0_1, %c0_2] : memref<8x128xf32, #tpu.memory_space<vmem>>, vector<8x128xf32>
    %cst_3 = arith.constant 2.500000e-01 : f32
    %4 = vector.broadcast %cst_3 : f32 to vector<8x128xf32>
    %5 = arith.mulf %3, %4 : vector<8x128xf32>
    %cst_4 = arith.constant dense<0xFF800000> : vector<8xf32>
    %6 = vector.multi_reduction <maximumf>, %2, %cst_4 [1] : vector<8x128xf32> to vector<8xf32>
    %7 = vector.shape_cast %6 : vector<8xf32> to vector<8x1xf32>
    %8 = vector.broadcast %7 : vector<8x1xf32> to vector<8x128xf32>
    %9 = arith.subf %2, %8 : vector<8x128xf32>
    %10 = math.exp %9 : vector<8x128xf32>
    %cst_5 = arith.constant dense<0.000000e+00> : vector<8xf32>
    %11 = vector.multi_reduction <add>, %10, %cst_5 [1] : vector<8x128xf32> to vector<8xf32>
    %12 = vector.shape_cast %11 : vector<8xf32> to vector<8x1xf32>
    %13 = math.log %12 : vector<8x1xf32>
    %14 = vector.broadcast %13 : vector<8x1xf32> to vector<8x128xf32>
    %15 = arith.subf %9, %14 : vector<8x128xf32>
    %cst_6 = arith.constant dense<0xFF800000> : vector<8xf32>
    %16 = vector.multi_reduction <maximumf>, %5, %cst_6 [1] : vector<8x128xf32> to vector<8xf32>
    %17 = vector.shape_cast %16 : vector<8xf32> to vector<8x1xf32>
    %18 = vector.broadcast %17 : vector<8x1xf32> to vector<8x128xf32>
    %19 = arith.subf %5, %18 : vector<8x128xf32>
    %20 = math.exp %19 : vector<8x128xf32>
    %cst_7 = arith.constant dense<0.000000e+00> : vector<8xf32>
    %21 = vector.multi_reduction <add>, %20, %cst_7 [1] : vector<8x128xf32> to vector<8xf32>
    %22 = vector.shape_cast %21 : vector<8xf32> to vector<8x1xf32>
    %23 = math.log %22 : vector<8x1xf32>
    %24 = vector.broadcast %23 : vector<8x1xf32> to vector<8x128xf32>
    %25 = arith.subf %19, %24 : vector<8x128xf32>
    %26 = arith.subf %25, %15 : vector<8x128xf32>
    %27 = arith.mulf %20, %26 : vector<8x128xf32>
    %cst_8 = arith.constant dense<0.000000e+00> : vector<8xf32>
    %28 = vector.multi_reduction <add>, %27, %cst_8 [1] : vector<8x128xf32> to vector<8xf32>
    %29 = vector.shape_cast %28 : vector<8xf32> to vector<8x1xf32>
    %30 = tpu.reciprocal %22 : vector<8x1xf32> -> vector<8x1xf32>
    %31 = arith.mulf %29, %30 : vector<8x1xf32>
    %c8_i32 = arith.constant 8 : i32
    %32 = arith.muli %arg0, %c8_i32 : i32
    %33 = tpu.iota {dimensions = array<i32: 0>} : vector<8x1xi32>
    %34 = vector.broadcast %32 : i32 to vector<8x1xi32>
    %35 = arith.addi %34, %33 : vector<8x1xi32>
    %c8_i32_9 = arith.constant 8 : i32
    %36 = vector.broadcast %c8_i32_9 : i32 to vector<8x1xi32>
    %37 = arith.cmpi slt, %35, %36 : vector<8x1xi32>
    %cst_10 = arith.constant 0.000000e+00 : f32
    %38 = vector.broadcast %cst_10 : f32 to vector<8x1xf32>
    %39 = arith.select %37, %31, %38 : vector<8x1xi1>, vector<8x1xf32>
    %c0_11 = arith.constant 0 : index
    %c0_12 = arith.constant 0 : index
    %40 = vector.load %arg3[%c0_11, %c0_12] : memref<8x1xf32, #tpu.memory_space<vmem>>, vector<8x1xf32>
    tpu.vector_store %arg3[%c0_11, %c0_12], %39 {strides = array<i32>} : memref<8x1xf32, #tpu.memory_space<vmem>>, vector<8x1xf32>,
    return
  }
  func.func @transform_0(%arg0: i32) -> (i32, i32) {
    %c0_i32 = arith.constant 0 : i32
    %c0_i32_0 = arith.constant 0 : i32
    return %arg0, %c0_i32 : i32, i32
  }
  func.func @transform_1(%arg0: i32) -> (i32, i32) {
    %c0_i32 = arith.constant 0 : i32
    %c0_i32_0 = arith.constant 0 : i32
    return %arg0, %c0_i32 : i32, i32
  }
  func.func @transform_2(%arg0: i32) -> (i32, i32) {
    %c0_i32 = arith.constant 0 : i32
    %c0_i32_0 = arith.constant 0 : i32
    return %arg0, %c0_i32 : i32, i32
  }
}

</mosaic_0001>

<bundles_post_ra>
// kernel: tpu_custom_call.1
= control target key start
LH: loop header
LB: loop body
LE: loop exit
PB: predicated region body
PF: predicated region fallthrough
CT: control target
= control target key end

     0   :  { %7 = vsyncpa [#allocation3], 0  ;;  %s187_s0 = inlined_call_operand.hbm [shape: f32[8,128], index: 0, kind: input, shape index: {}]   ;;  %s188_s1 = inlined_call_operand.hbm [shape: f32[8,128], index: 1, kind: input, shape index: {}]   ;;  %s189_s2 = inlined_call_operand.vmem [shape: f32[8,1], index: 2, kind: output, shape index: {}]  }
   0x1   :  { %s14_s11 = sshll.u32 %s187_s0, 4  ;;  %s15_s11 = int_to_ptr.hbm [resolvable:$true] %s14_s11 }
   0x2   :  { %8 = vsyncpa [#allocation5], 0  ;;  %s161_s12 = smov [#allocation2]   ;;  %s25_s16 = sshll.u32 %s188_s1, 4  ;;  %s26_s16 = int_to_ptr.hbm [resolvable:$true] %s25_s16 }
   0x3   :  { %s16_s13 = sshll.u32 %s161_s12, 4  ;;  %s162_s17 = smov [#allocation4]   ;;  %s17_s13 = int_to_ptr.vmem [resolvable:$true] %s16_s13 }
   0x4   :  { %19 = dma.hbm_to_vmem [thread:$0]  %s15_s11, 128, %s17_s13, [#allocation3]  }
   0x5   :  { %s27_s18 = sshll.u32 %s162_s17, 4  ;;  %s28_s18 = int_to_ptr.vmem [resolvable:$true] %s27_s18 }
   0x6   :  { %30 = dma.hbm_to_vmem [thread:$0]  %s26_s16, 128, %s28_s18, [#allocation5]  }
   0x7   :  { %157 = dma.done.wait [#allocation3], 128  }
   0x8   :  { %158 = vsyncadd [#allocation3], 4294967168 }
   0x9   :  { %159 = dma.done.wait [#allocation5], 128  }
   0xa   :  { %160 = vsyncadd [#allocation5], 4294967168  ;;  %v39_v0 = vld [vmem:[#allocation2] sm:$0xff]  ;;  %v41_v2 = vld [vmem:[#allocation4] sm:$0xff]  ;;  %vm89_vm4 = vcmask 7168  }
   0xb   :  { %v40_v1 = vmul.f32 0.25, %v39_v0  ;;  %v42_v3 = vmul.f32 0.25, %v41_v2 }
   0xd   :  { %43 = vmax.xlane.f32.xlu0 %v40_v1 }
  0x15   :  { %53 = vmax.xlane.f32.xlu0 %v42_v3 }
  0x80   :  { %v44_v4 = vpop.xlane.xlu0 %43 }
  0x81   :  { %v45_v5 = vsub.f32 %v40_v1, %v44_v4 }
  0x83   :  { %v46_v6 = vmul.f32 1.442695, %v45_v5 }
  0x85   :  { %99 = vpow2.f32 %v46_v6 }
  0x88   :  { %v54_v7 = vpop.xlane.xlu0 %53 }
  0x89   :  { %v55_v8 = vsub.f32 %v42_v3, %v54_v7 }
  0x8b   :  { %v100_v9 = vpop.eup %99  ;;  %v56_v10 = vmul.f32 1.442695, %v55_v8 }
  0x8c   :  { %48 = vadd.xlane.f32.xlu1 %v100_v9 }
  0x8d   :  { %101 = vpow2.f32 %v56_v10 }
  0x93   :  { %v102_v11 = vpop.eup %101 }
  0x94   :  { %58 = vadd.xlane.f32.xlu1 %v102_v11 }
  0xff   :  { %v49_v12 = vpop.xlane.xlu1 %48 }
 0x100   :  { %103 = vlog2.f32 %v49_v12 }
 0x106   :  { %v104_v14 = vpop.eup %103 }
 0x107   :  { %v59_v13 = vpop.xlane.xlu1 %58  ;;  %v51_v15 = vmul.f32 0.6931472, %v104_v14 }
 0x108   :  { %105 = vlog2.f32 %v59_v13  ;;  %v78_v27 = vand.u32 2147483648, %v59_v13  ;;  %vm72_vm1 = vweird.f32 %v59_v13  ;;  %v76_v28 = vand.u32 2147483647, %v59_v13 }
 0x109   :  { %v52_v18 = vsub.f32 %v45_v5, %v51_v15  ;;  %107 = vrcp.f32 %v59_v13 }
 0x10a   :  { %v79_v30 = vor.u32 1.1754944e-38, %v78_v27  ;;  %vm77_vm3 = vcmp.eq.f32.partialorder %v76_v28, 8.507059e+37 }
 0x10e   :  { %v106_v16 = vpop.eup %105 }
 0x10f   :  { %v61_v17 = vmul.f32 0.6931472, %v106_v16  ;;  %v108_v22 = vpop.eup %107 }
 0x110   :  { %v68_v23 = vmul.f32 %v108_v22, %v59_v13  ;;  %vm73_vm0 = vweird.f32 %v108_v22 }
 0x111   :  { %v62_v19 = vsub.f32 %v55_v8, %v61_v17  ;;  %vm74_vm2 = vmor %vm72_vm1, %vm73_vm0 }
 0x112   :  { %v69_v24 = vsub.f32 1.0, %v68_v23 }
 0x113   :  { %v63_v20 = vsub.f32 %v62_v19, %v52_v18 }
 0x114   :  { %v70_v25 = vmul.f32 %v108_v22, %v69_v24 }
 0x115   :  { %v64_v21 = vmul.f32 %v102_v11, %v63_v20 }
 0x116   :  { %v71_v26 = vadd.f32 %v108_v22, %v70_v25 }
 0x117   :  { %65 = vadd.xlane.f32.xlu2 %v64_v21 }
 0x118   :  { %v75_v29 = vsel %vm74_vm2, %v108_v22, %v71_v26 }
 0x119   :  { %v80_v31 = vsel %vm77_vm3, %v79_v30, %v75_v29 }
 0x18a   :  { %v66_v32 = vpop.xlane.xlu2 %65 }
 0x18b   :  { %v81_v33 = vmul.f32 %v80_v31, %v66_v32 }
 0x18d   :  { %90 = vst.msk [vmem:[%s189_s2] sm:$0xff] %vm89_vm4, %v81_v33 }
 0x18e   :  { %95 = vsyncpa [#allocation3], 1 }
 0x18f   :  { %96 = vsyncpa [#allocation5], 1 }

</bundles_post_ra>
